<compile_context>
chip_gen: v7x
topology: tpu7x:2x2x1
jax: 0.10.0
libtpu: 0.0.40
codegen_flags: <defaults>
</compile_context>

<pallas_src>
import functools

import jax
import jax.numpy as jnp
from jax.experimental import pallas as pl
from jax.experimental.pallas import tpu as pltpu


# ---------------------------------------------------------------------------
# Kernel: one batch tile through all three Linear+ReLU layers.
# ---------------------------------------------------------------------------
def _mlp_kernel(x_ref, w1_ref, b1_ref, w2_ref, b2_ref, w3_ref, b3_ref, o_ref):
    # layer1: Linear(in, h1) + ReLU   (bf16 MXU inputs, f32 accumulate + epilogue)
    h = jnp.dot(x_ref[...], w1_ref[...], preferred_element_type=jnp.float32)
    h = jnp.maximum(h + b1_ref[...], 0.0)
    # layer2: Linear(h1, h2) + ReLU
    h = jnp.dot(h.astype(jnp.bfloat16), w2_ref[...], preferred_element_type=jnp.float32)
    h = jnp.maximum(h + b2_ref[...], 0.0)
    # layer3: Linear(h2, out) + ReLU  (the PyTorch Net really does ReLU its output)
    h = jnp.dot(h.astype(jnp.bfloat16), w3_ref[...], preferred_element_type=jnp.float32)
    h = jnp.maximum(h + b3_ref[...], 0.0)
    o_ref[...] = h.astype(o_ref.dtype)


# ---------------------------------------------------------------------------
# Wrapper
# ---------------------------------------------------------------------------
def _round_up(n, m):
    return ((n + m - 1) // m) * m


def prepare_params(params):
    """One-time parameter prep (hoisted out of the per-call path).

    params = (w1, b1, w2, b2, w3, b3) with w_i of shape (in, out) (== PyTorch
    weight.T) and b_i of shape (out,) or (1, out).  Returns weights cast to
    bf16 (MXU-native, half the DMA) and biases as f32 (1, out)."""
    w1, b1, w2, b2, w3, b3 = params
    prep_w = lambda w: jnp.asarray(w, jnp.bfloat16)
    prep_b = lambda b: jnp.asarray(b, jnp.float32).reshape(1, -1)
    return (prep_w(w1), prep_b(b1), prep_w(w2), prep_b(b2), prep_w(w3), prep_b(b3))


def _choose_batch_tile(batch, tb_max):
    """Near-even batch split; tiles are multiples of 16 (bf16 sublane packing)."""
    n_tiles = max(1, -(-batch // tb_max))
    # Give both v7x TensorCores work once each core would get a decent tile;
    # the extra grid step (~0.35 us) is harmless on single-TC chips.
    if batch >= 512:
        n_tiles = max(n_tiles + (n_tiles & 1), 2)
    tb = _round_up(-(-batch // n_tiles), 16)
    grid_len = -(-batch // tb)
    return tb, grid_len


@functools.partial(jax.jit, static_argnames=("tb_max",))
def net_forward(x, prepared_params, *, tb_max=1024):
    """x: (batch, in_dim); prepared_params from prepare_params().
    Returns relu(relu(relu(x@w1+b1)@w2+b2)@w3+b3) in x.dtype."""
    w1, b1, w2, b2, w3, b3 = prepared_params
    batch, in_dim = x.shape
    h1, h2, out_dim = w1.shape[1], w2.shape[1], w3.shape[1]
    out_dtype = x.dtype

    tb, grid_len = _choose_batch_tile(batch, tb_max)
    batch_p = grid_len * tb

    # bf16 activations: 2 bytes/elem input DMA; matmul accumulation stays f32,
    # so precision is identical to casting inside the kernel.
    x_p = x.astype(jnp.bfloat16)
    if batch_p != batch:
        x_p = jnp.pad(x_p, ((0, batch_p - batch), (0, 0)))

    flops = 2 * batch_p * (in_dim * h1 + h1 * h2 + h2 * out_dim)
    bytes_accessed = (
        batch_p * in_dim * 2                            # x (bf16)
        + (w1.size + w2.size + w3.size) * 2             # weights (bf16, once)
        + (b1.size + b2.size + b3.size) * 4             # biases (f32, once)
        + batch_p * out_dim * 4                         # output (f32)
    )

    out_padded = pl.pallas_call(
        _mlp_kernel,
        out_shape=jax.ShapeDtypeStruct((batch_p, out_dim), out_dtype),
        grid_spec=pltpu.PrefetchScalarGridSpec(
            num_scalar_prefetch=0,
            grid=(grid_len,),
            in_specs=[
                # x: one batch tile per grid step (auto double-buffered);
                # last dim is full-extent (unpadded), Mosaic pads in VMEM.
                pl.BlockSpec((tb, in_dim), lambda i: (i, 0)),
                # weights / biases: full-extent blocks with constant index_map
                # -> VMEM-resident, DMA'd once.
                pl.BlockSpec((in_dim, h1), lambda i: (0, 0)),
                pl.BlockSpec((1, h1), lambda i: (0, 0)),
                pl.BlockSpec((h1, h2), lambda i: (0, 0)),
                pl.BlockSpec((1, h2), lambda i: (0, 0)),
                pl.BlockSpec((h2, out_dim), lambda i: (0, 0)),
                pl.BlockSpec((1, out_dim), lambda i: (0, 0)),
            ],
            # Output with its true (unpadded) last dim -> minimal writeback bytes.
            out_specs=pl.BlockSpec((tb, out_dim), lambda i: (i, 0)),
        ),
        compiler_params=pltpu.CompilerParams(
            dimension_semantics=("parallel",),      # shard batch tiles across v7x TCs
            vmem_limit_bytes=32 * 1024 * 1024,      # headroom for big tiles (v5e default 16 MiB)
        ),
        cost_estimate=pl.CostEstimate(
            flops=flops, transcendentals=0, bytes_accessed=bytes_accessed),
    )(x_p, w1, b1, w2, b2, w3, b3)

    # Strip batch padding (padded rows carry relu(bias) garbage by design).
    if batch_p != batch:
        out_padded = out_padded[:batch]
    return out_padded


# ---------------------------------------------------------------------------
# Params + reference
# ---------------------------------------------------------------------------
def init_params(key, in_dim, n_hidden_1, n_hidden_2, out_dim, dtype=jnp.float32):
    """Deterministic init mimicking nn.Linear's uniform(-1/sqrt(fan_in), +) init."""
    ks = jax.random.split(key, 6)

    def linear(kw, kb, fan_in, fan_out):
        bound = 1.0 / jnp.sqrt(jnp.asarray(fan_in, dtype))
        w = jax.random.uniform(kw, (fan_in, fan_out), dtype, -bound, bound)  # (in, out)
        b = jax.random.uniform(kb, (1, fan_out), dtype, -bound, bound)
        return w, b

    w1, b1 = linear(ks[0], ks[1], in_dim, n_hidden_1)
    w2, b2 = linear(ks[2], ks[3], n_hidden_1, n_hidden_2)
    w3, b3 = linear(ks[4], ks[5], n_hidden_2, out_dim)
    return (w1, b1, w2, b2, w3, b3)


def net_forward_ref(x, params):
    """Pure-JAX f32 reference for correctness checking."""
    w1, b1, w2, b2, w3, b3 = params
    h = jnp.maximum(x @ w1 + b1, 0.0)
    h = jnp.maximum(h @ w2 + b2, 0.0)
    return jnp.maximum(h @ w3 + b3, 0.0)


# ---------------------------------------------------------------------------
# Self-test
# ---------------------------------------------------------------------------
if __name__ == "__main__":
    in_dim, n_hidden_1, n_hidden_2, out_dim = 32, 64, 64, 16
    batch = 2

    key = jax.random.PRNGKey(0)
    k_x, k_p = jax.random.split(key)
    x = jax.random.normal(k_x, (batch, in_dim), jnp.float32)
    params = init_params(k_p, in_dim, n_hidden_1, n_hidden_2, out_dim)

    # One-time parameter prep, hoisted off the per-call forward path.
    prepared = prepare_params(params)
    prepared = jax.block_until_ready(prepared)

    out = net_forward(x, prepared)
    out = jax.block_until_ready(out)

    ref = net_forward_ref(x, params)
    assert out.shape == (batch, out_dim)
    # bf16 matmul inputs (f32 accumulation) -> loosened tolerance vs the f32 reference.
    err = jnp.max(jnp.abs(out - ref))
    assert jnp.allclose(out, ref, atol=3e-2, rtol=3e-2), f"max abs err = {err}"

    print("KERNEL_OK")
</pallas_src>

<mosaic_0001>
module attributes {stable_mosaic.version = 11 : i64} {
  func.func @_mlp_kernel(%arg0: i32, %arg1: memref<16x32xbf16, #tpu.memory_space<vmem>>, %arg2: memref<32x64xbf16, #tpu.memory_space<vmem>>, %arg3: memref<1x64xf32, #tpu.memory_space<vmem>>, %arg4: memref<64x64xbf16, #tpu.memory_space<vmem>>, %arg5: memref<1x64xf32, #tpu.memory_space<vmem>>, %arg6: memref<64x16xbf16, #tpu.memory_space<vmem>>, %arg7: memref<1x16xf32, #tpu.memory_space<vmem>>, %arg8: memref<16x16xf32, #tpu.memory_space<vmem>>) attributes {dimension_semantics = [#tpu.dimension_semantics<parallel>], iteration_bounds = array<i64: 1>, scalar_prefetch = 0 : i64, scratch_operands = 0 : i64, tpu.core_type = #tpu.core_type<tc>, window_params = [{transform_indices = @transform_0, window_bounds = array<i64: 16, 32>}, {pipeline_mode = #tpu.pipeline_mode<synchronous>, transform_indices = @transform_1, window_bounds = array<i64: 32, 64>}, {pipeline_mode = #tpu.pipeline_mode<synchronous>, transform_indices = @transform_2, window_bounds = array<i64: 1, 64>}, {pipeline_mode = #tpu.pipeline_mode<synchronous>, transform_indices = @transform_3, window_bounds = array<i64: 64, 64>}, {pipeline_mode = #tpu.pipeline_mode<synchronous>, transform_indices = @transform_4, window_bounds = array<i64: 1, 64>}, {pipeline_mode = #tpu.pipeline_mode<synchronous>, transform_indices = @transform_5, window_bounds = array<i64: 64, 16>}, {pipeline_mode = #tpu.pipeline_mode<synchronous>, transform_indices = @transform_6, window_bounds = array<i64: 1, 16>}, {transform_indices = @transform_7, window_bounds = array<i64: 16, 16>}]} {
    %c0 = arith.constant 0 : index
    %c0_0 = arith.constant 0 : index
    %0 = vector.load %arg1[%c0, %c0_0] : memref<16x32xbf16, #tpu.memory_space<vmem>>, vector<16x32xbf16>
    %c0_1 = arith.constant 0 : index
    %c0_2 = arith.constant 0 : index
    %1 = vector.load %arg2[%c0_1, %c0_2] : memref<32x64xbf16, #tpu.memory_space<vmem>>, vector<32x64xbf16>
    %cst = arith.constant dense<0.000000e+00> : vector<16x64xf32>
    %2 = tpu.matmul %0, %1, %cst {dimension_numbers = #tpu.dot_dimension_numbers<[1], [0], [0], [1], [0, 0, 1, 1], [], []>} : vector<16x32xbf16>, vector<32x64xbf16>, vector<16x64xf32> -> vector<16x64xf32>
    %c0_3 = arith.constant 0 : index
    %c0_4 = arith.constant 0 : index
    %3 = vector.load %arg3[%c0_3, %c0_4] : memref<1x64xf32, #tpu.memory_space<vmem>>, vector<1x64xf32>
    %4 = vector.broadcast %3 : vector<1x64xf32> to vector<16x64xf32>
    %5 = arith.addf %2, %4 : vector<16x64xf32>
    %cst_5 = arith.constant 0.000000e+00 : f32
    %6 = vector.broadcast %cst_5 : f32 to vector<16x64xf32>
    %7 = arith.maximumf %5, %6 : vector<16x64xf32>
    %8 = arith.truncf %7 : vector<16x64xf32> to vector<16x64xbf16>
    %c0_6 = arith.constant 0 : index
    %c0_7 = arith.constant 0 : index
    %9 = vector.load %arg4[%c0_6, %c0_7] : memref<64x64xbf16, #tpu.memory_space<vmem>>, vector<64x64xbf16>
    %cst_8 = arith.constant dense<0.000000e+00> : vector<16x64xf32>
    %10 = tpu.matmul %8, %9, %cst_8 {dimension_numbers = #tpu.dot_dimension_numbers<[1], [0], [0], [1], [0, 0, 1, 1], [], []>} : vector<16x64xbf16>, vector<64x64xbf16>, vector<16x64xf32> -> vector<16x64xf32>
    %c0_9 = arith.constant 0 : index
    %c0_10 = arith.constant 0 : index
    %11 = vector.load %arg5[%c0_9, %c0_10] : memref<1x64xf32, #tpu.memory_space<vmem>>, vector<1x64xf32>
    %12 = vector.broadcast %11 : vector<1x64xf32> to vector<16x64xf32>
    %13 = arith.addf %10, %12 : vector<16x64xf32>
    %cst_11 = arith.constant 0.000000e+00 : f32
    %14 = vector.broadcast %cst_11 : f32 to vector<16x64xf32>
    %15 = arith.maximumf %13, %14 : vector<16x64xf32>
    %16 = arith.truncf %15 : vector<16x64xf32> to vector<16x64xbf16>
    %c0_12 = arith.constant 0 : index
    %c0_13 = arith.constant 0 : index
    %17 = vector.load %arg6[%c0_12, %c0_13] : memref<64x16xbf16, #tpu.memory_space<vmem>>, vector<64x16xbf16>
    %cst_14 = arith.constant dense<0.000000e+00> : vector<16x16xf32>
    %18 = tpu.matmul %16, %17, %cst_14 {dimension_numbers = #tpu.dot_dimension_numbers<[1], [0], [0], [1], [0, 0, 1, 1], [], []>} : vector<16x64xbf16>, vector<64x16xbf16>, vector<16x16xf32> -> vector<16x16xf32>
    %c0_15 = arith.constant 0 : index
    %c0_16 = arith.constant 0 : index
    %19 = vector.load %arg7[%c0_15, %c0_16] : memref<1x16xf32, #tpu.memory_space<vmem>>, vector<1x16xf32>
    %20 = vector.broadcast %19 : vector<1x16xf32> to vector<16x16xf32>
    %21 = arith.addf %18, %20 : vector<16x16xf32>
    %cst_17 = arith.constant 0.000000e+00 : f32
    %22 = vector.broadcast %cst_17 : f32 to vector<16x16xf32>
    %23 = arith.maximumf %21, %22 : vector<16x16xf32>
    %c0_18 = arith.constant 0 : index
    %c0_19 = arith.constant 0 : index
    %24 = vector.load %arg8[%c0_18, %c0_19] : memref<16x16xf32, #tpu.memory_space<vmem>>, vector<16x16xf32>
    tpu.vector_store %arg8[%c0_18, %c0_19], %23 {strides = array<i32>} : memref<16x16xf32, #tpu.memory_space<vmem>>, vector<16x16xf32>,
    return
  }
  func.func @transform_0(%arg0: i32) -> (i32, i32) {
    %c0_i32 = arith.constant 0 : i32
    %c0_i32_0 = arith.constant 0 : i32
    return %arg0, %c0_i32 : i32, i32
  }
  func.func @transform_1(%arg0: i32) -> (i32, i32) {
    %c0_i32 = arith.constant 0 : i32
    %c0_i32_0 = arith.constant 0 : i32
    %c0_i32_1 = arith.constant 0 : i32
    return %c0_i32, %c0_i32_0 : i32, i32
  }
  func.func @transform_2(%arg0: i32) -> (i32, i32) {
    %c0_i32 = arith.constant 0 : i32
    %c0_i32_0 = arith.constant 0 : i32
    %c0_i32_1 = arith.constant 0 : i32
    return %c0_i32, %c0_i32_0 : i32, i32
  }
  func.func @transform_3(%arg0: i32) -> (i32, i32) {
    %c0_i32 = arith.constant 0 : i32
    %c0_i32_0 = arith.constant 0 : i32
    %c0_i32_1 = arith.constant 0 : i32
    return %c0_i32, %c0_i32_0 : i32, i32
  }
  func.func @transform_4(%arg0: i32) -> (i32, i32) {
    %c0_i32 = arith.constant 0 : i32
    %c0_i32_0 = arith.constant 0 : i32
    %c0_i32_1 = arith.constant 0 : i32
    return %c0_i32, %c0_i32_0 : i32, i32
  }
  func.func @transform_5(%arg0: i32) -> (i32, i32) {
    %c0_i32 = arith.constant 0 : i32
    %c0_i32_0 = arith.constant 0 : i32
    %c0_i32_1 = arith.constant 0 : i32
    return %c0_i32, %c0_i32_0 : i32, i32
  }
  func.func @transform_6(%arg0: i32) -> (i32, i32) {
    %c0_i32 = arith.constant 0 : i32
    %c0_i32_0 = arith.constant 0 : i32
    %c0_i32_1 = arith.constant 0 : i32
    return %c0_i32, %c0_i32_0 : i32, i32
  }
  func.func @transform_7(%arg0: i32) -> (i32, i32) {
    %c0_i32 = arith.constant 0 : i32
    %c0_i32_0 = arith.constant 0 : i32
    return %arg0, %c0_i32 : i32, i32
  }
}

</mosaic_0001>

<bundles_post_ra>
// kernel: net_forward.1
= control target key start
LH: loop header
LB: loop body
LE: loop exit
PB: predicated region body
PF: predicated region fallthrough
CT: control target
= control target key end

     0   :  { %v359_v0 = vmov 0.0   ;;  %vm360_vm0 = vmmov 0   ;;  %vm57_vm1 = vcmask 261120   ;;  %vm144_vm2 = vcmask 523264   ;;  %s454_s1 = inlined_call_operand.vmem [shape: bf16[32,64], index: 1, kind: input, shape index: {}]   ;;  %s455_s3 = inlined_call_operand.vmem [shape: bf16[64,64], index: 3, kind: input, shape index: {}]   ;;  %s456_s0 = inlined_call_operand.vmem [shape: bf16[16,32], index: 0, kind: input, shape index: {}]   ;;  %s457_s5 = inlined_call_operand.vmem [shape: bf16[64,16], index: 5, kind: input, shape index: {}]   ;;  %s458_s2 = inlined_call_operand.vmem [shape: f32[1,64], index: 2, kind: input, shape index: {}]   ;;  %s459_s4 = inlined_call_operand.vmem [shape: f32[1,64], index: 4, kind: input, shape index: {}]   ;;  %s460_s6 = inlined_call_operand.vmem [shape: f32[1,16], index: 6, kind: input, shape index: {}]   ;;  %s461_s7 = inlined_call_operand.vmem [shape: f32[16,16], index: 7, kind: output, shape index: {}]  }
   0x1   :  { %314 = vmatprep.subr.bf16.mxu0 %v359_v0  ;;  %v348_v1 = vld [vmem:[%s454_s1] sm:$0xff]   ;;  %318 = vmatprep.mubr.msk.bf16.mxu0 %vm360_vm0, %v359_v0  ;;  %v349_v2 = vld [vmem:[%s454_s1 + $0x8] sm:$0xff]   ;;  %v353_v6 = vld [vmem:[%s455_s3 + $0x10] sm:$0xff]   ;;  %vm277_vm3 = vcmask 130048  }
   0x2   :  { %322 = vmatprep.subr.bf16.mxu1 %v359_v0  ;;  %330 = vmatprep.mubr.msk.bf16.mxu1 %vm360_vm0, %v359_v0  ;;  %v351_v3 = vld [vmem:[%s455_s3] sm:$0xff]   ;;  %v352_v5 = vld [vmem:[%s455_s3 + $0x8] sm:$0xff]   ;;  %v354_v7 = vld [vmem:[%s455_s3 + $0x18] sm:$0xff]  }
   0x3   :  { %315 = vmatpush3.bf16.msra.mxu0 %v348_v1  ;;  %v350_v4 = vld [vmem:[%s456_s0] sm:$0xff]   ;;  %323 = vmatpush3.bf16.msra.mxu1 %v351_v3  ;;  %v356_v9 = vld [vmem:[%s457_s5 + $0x8] sm:$0xff]   ;;  %v357_v20 = vld [vmem:[%s457_s5 + $0x10] sm:$0xff]  }
   0x4   :  { %316 = vmatprep.subr.bf16.mxu0 %v359_v0  ;;  %324 = vmatprep.subr.bf16.mxu1 %v359_v0  ;;  %v355_v8 = vld [vmem:[%s457_s5] sm:$0xff]   ;;  %v358_v21 = vld [vmem:[%s457_s5 + $0x18] sm:$0xff]  }
   0x5   :  { %v284_v10 = vld [vmem:[%s458_s2] ss:$0 sm:$0xff] }
   0x6   :  { %v289_v22 = vld [vmem:[%s459_s4] ss:$0 sm:$0xff] }
   0x7   :  { %317 = vmatpush3.bf16.msra.mxu0 %v349_v2  ;;  %325 = vmatpush3.bf16.msra.mxu1 %v352_v5  ;;  %v295_v32 = vld [vmem:[%s460_s6] ss:$0 sm:$0xff] }
   0x8   :  { %334 = vmatprep.subr.bf16.mxu0 %v359_v0  ;;  %326 = vmatprep.subr.bf16.mxu1 %v359_v0 }
   0xa   :  { %319 = vmatmul.mubr.msk.bf16.vlgmr.msra.gmra.mrb[0].mxu0 %vm57_vm1, %v350_v4 }
   0xb   :  { %342 = vmatprep.mubr.msk.bf16.mxu0 %vm360_vm0, %v359_v0  ;;  %327 = vmatpush3.bf16.msra.mxu1 %v353_v6 }
   0xc   :  { %328 = vmatprep.subr.bf16.mxu1 %v359_v0  ;;  %335 = vmatpush3.bf16.msra.mxu0 %v355_v8 }
   0xd   :  { %336 = vmatprep.subr.bf16.mxu0 %v359_v0 }
   0xf   :  { %329 = vmatpush3.bf16.msra.mxu1 %v354_v7 }
  0x10   :  { %337 = vmatpush3.bf16.msra.mxu0 %v356_v9 }
  0x11   :  { %338 = vmatprep.subr.bf16.mxu0 %v359_v0 }
  0x14   :  { %339 = vmatpush3.bf16.msra.mxu0 %v357_v20 }
  0x15   :  { %340 = vmatprep.subr.bf16.mxu0 %v359_v0 }
  0x18   :  { %341 = vmatpush3.bf16.msra.mxu0 %v358_v21 }
  0xdd   :  { %v95_v11 = vpop.f32.mrb[0].mxu0 }
  0xde   :  { %v96_v12 = vadd.f32 %v284_v10, %v95_v11  ;;  %v320_v13 = vpop.f32.mrb[1].mxu0 }
  0xdf   :  { %v98_v14 = vpop.f32.mrb[2].mxu0 }
  0xe0   :  { %v99_v15 = vadd.f32 %v284_v10, %v98_v14  ;;  %v321_v16 = vpop.f32.mrb[3].mxu0  ;;  %v102_v17 = vmax.f32 %v96_v12, 0.0 }
  0xe2   :  { %v103_v18 = vmax.f32 %v99_v15, 0.0 }
  0xe4   :  { %v104_v19 = vpack.c.bf16 %v103_v18, %v102_v17 }
  0xe6   :  { %331 = vmatmul.mubr.msk.bf16.vlgmr.msra.gmra.mrb[0].mxu1 %vm144_vm2, %v104_v19 }
 0x1b9   :  { %v182_v23 = vpop.f32.mrb[0].mxu1 }
 0x1ba   :  { %v183_v24 = vadd.f32 %v289_v22, %v182_v23  ;;  %v332_v25 = vpop.f32.mrb[1].mxu1 }
 0x1bb   :  { %v185_v26 = vpop.f32.mrb[2].mxu1 }
 0x1bc   :  { %v186_v27 = vadd.f32 %v289_v22, %v185_v26  ;;  %v333_v28 = vpop.f32.mrb[3].mxu1  ;;  %v189_v29 = vmax.f32 %v183_v24, 0.0 }
 0x1be   :  { %v190_v30 = vmax.f32 %v186_v27, 0.0 }
 0x1c0   :  { %v191_v31 = vpack.c.bf16 %v190_v30, %v189_v29 }
 0x1c2   :  { %343 = vmatmul.mubr.msk.bf16.vlgmr.msra.gmra.mrb[4].mxu0 %vm144_vm2, %v191_v31 }
 0x295   :  { %v268_v33 = vpop.f32.mrb[4].mxu0 }
 0x296   :  { %v269_v34 = vadd.f32 %v295_v32, %v268_v33  ;;  %v344_v35 = vpop.f32.mrb[5].mxu0 }
 0x297   :  { %v271_v36 = vpop.f32.mrb[6].mxu0 }
 0x298   :  { %v275_v37 = vmax.f32 %v269_v34, 0.0  ;;  %v272_v38 = vadd.f32 %v295_v32, %v271_v36  ;;  %v345_v39 = vpop.f32.mrb[7].mxu0 }
 0x29a   :  { %278 = vst.msk [vmem:[%s461_s7] sm:$0xff] %vm277_vm3, %v275_v37  ;;  %v276_v40 = vmax.f32 %v272_v38, 0.0 }
 0x29c   :  { %279 = vst.msk [vmem:[%s461_s7 + $0x8] sm:$0xff] %vm277_vm3, %v276_v40 }

</bundles_post_ra>
